<compile_context>
chip_gen: v7x
topology: tpu7x:2x2x1
jax: 0.10.0
libtpu: 0.0.40
codegen_flags: <defaults>
</compile_context>

<pallas_src>
import functools

import jax
import jax.numpy as jnp
from jax.experimental import pallas as pl
from jax.experimental.pallas import tpu as pltpu


def _round_up(x, m):
    return (x + m - 1) // m * m


# ---------------------------------------------------------------------------
# Pass 1: row degrees (accumulated over K tiles of A) + scaled linear part.
#   h_s = (x @ W + b) * d_inv      (stored bf16)
#   d_inv = rsqrt(rowsum(A) + 1)   (stored f32)
# ---------------------------------------------------------------------------
def linear_degree_kernel(g_ref, x_ref, w_ref, b_ref, h_ref, dinv_ref, deg_acc):
    k = pl.program_id(1)

    @pl.when(k == 0)
    def _():
        deg_acc[...] = jnp.zeros_like(deg_acc)

    # Partial row sums of this (TM, TK1) adjacency tile, accumulated in f32.
    deg_acc[...] += jnp.sum(g_ref[...].astype(jnp.float32), axis=1,
                            keepdims=True)

    @pl.when(k == pl.num_programs(1) - 1)
    def _():
        # +1.0 is the implicit self loop (A + I); guarantees deg >= 1.
        d_inv = jax.lax.rsqrt(deg_acc[...] + 1.0)                 # [TM, 1]
        # x @ W + b in f32 (negligible FLOP share vs the N^2 aggregation).
        h = jnp.dot(x_ref[...], w_ref[...],
                    preferred_element_type=jnp.float32) + b_ref[...]
        h_ref[...] = (h * d_inv).astype(h_ref.dtype)              # bf16 store
        dinv_ref[...] = d_inv


# ---------------------------------------------------------------------------
# Pass 2: tiled aggregation  out = ReLU( d_inv * (A @ h_s + h_s) ).
#   `resident=True`: h_ref is the full (n_pad, f_pad) bf16 array in VMEM and
#   the current k-chunk is sliced with pl.ds.  Otherwise h_ref is a streamed
#   (tile, f_pad) bf16 block.  Self loop is added when k == i (tm == tk).
# ---------------------------------------------------------------------------
def aggregate_kernel(g_ref, h_ref, dinv_ref, o_ref, acc_ref, *, tile, resident):
    i = pl.program_id(0)
    k = pl.program_id(1)

    @pl.when(k == 0)
    def _():
        acc_ref[...] = jnp.zeros_like(acc_ref)

    if resident:
        off = pl.multiple_of(k * tile, tile)
        h_chunk = h_ref[pl.ds(off, tile), :]          # (tile, f_pad) bf16
    else:
        h_chunk = h_ref[...]                          # (tile, f_pad) bf16

    # Dominant matmul: bf16 x bf16 inputs, f32 accumulation on the MXU.
    acc_ref[...] += jnp.dot(g_ref[...], h_chunk,
                            preferred_element_type=jnp.float32)

    # Self loop: at k == i the h chunk holds exactly this row tile (tm == tk).
    @pl.when(k == i)
    def _():
        acc_ref[...] += h_chunk.astype(jnp.float32)

    @pl.when(k == pl.num_programs(1) - 1)
    def _():
        o_ref[...] = jnp.maximum(acc_ref[...] * dinv_ref[...],
                                 0.0).astype(o_ref.dtype)


@functools.partial(jax.jit, static_argnames=("tile_n",))
def msg_pass_module(x, graph, weight, bias, *, tile_n=512):
    n, m = x.shape
    f = weight.shape[1]

    tile = min(tile_n, _round_up(n, 128))
    n_pad = _round_up(n, tile)
    m_pad = _round_up(m, 128)
    f_pad = _round_up(f, 128)

    x_p = jnp.zeros((n_pad, m_pad), jnp.float32).at[:n, :m].set(
        x.astype(jnp.float32))
    # Adjacency stored bf16: halves the dominant HBM traffic, feeds the MXU
    # at full bf16 rate (f32 accumulation inside the kernels).
    g_p = jnp.zeros((n_pad, n_pad), jnp.bfloat16).at[:n, :n].set(
        graph.astype(jnp.bfloat16))
    w_p = jnp.zeros((m_pad, f_pad), jnp.float32).at[:m, :f].set(
        weight.astype(jnp.float32))
    b_p = jnp.zeros((1, f_pad), jnp.float32).at[:, :f].set(
        bias.astype(jnp.float32))

    cparams = pltpu.CompilerParams(
        dimension_semantics=("parallel", "arbitrary"),
        vmem_limit_bytes=32 * 1024 * 1024,
    )

    # ---- Pass 1: degrees + h_s = (x @ W + b) * d_inv  (large K tile) --------
    row_tiles = n_pad // tile
    mult = 1
    for c in (8, 4, 2, 1):
        if row_tiles % c == 0 and c * tile <= 2048:
            mult = c
            break
    tk1 = mult * tile
    grid1 = (row_tiles, n_pad // tk1)

    h_scaled, d_inv = pl.pallas_call(
        linear_degree_kernel,
        out_shape=(jax.ShapeDtypeStruct((n_pad, f_pad), jnp.bfloat16),
                   jax.ShapeDtypeStruct((n_pad, 1), jnp.float32)),
        grid_spec=pltpu.PrefetchScalarGridSpec(
            num_scalar_prefetch=0,
            grid=grid1,
            in_specs=[
                pl.BlockSpec((tile, tk1), lambda i, k: (i, k)),      # A tile
                pl.BlockSpec((tile, m_pad), lambda i, k: (i, 0)),    # x rows
                pl.BlockSpec((m_pad, f_pad), lambda i, k: (0, 0)),   # W
                pl.BlockSpec((1, f_pad), lambda i, k: (0, 0)),       # bias
            ],
            out_specs=(
                pl.BlockSpec((tile, f_pad), lambda i, k: (i, 0)),    # h_s (bf16)
                pl.BlockSpec((tile, 1), lambda i, k: (i, 0)),        # d_inv
            ),
            scratch_shapes=[pltpu.VMEM((tile, 1), jnp.float32)],
        ),
        compiler_params=cparams,
        cost_estimate=pl.CostEstimate(
            flops=2 * n_pad * m_pad * f_pad + n_pad * n_pad,
            transcendentals=n_pad,
            bytes_accessed=n_pad * n_pad * 2
            + n_pad * m_pad * 4 + m_pad * f_pad * 4 + f_pad * 4
            + n_pad * f_pad * 2 + n_pad * 4),
    )(g_p, x_p, w_p, b_p)

    # ---- Pass 2: out = ReLU( d_inv * (A @ h_s + h_s) ) ----------------------
    # Keep bf16 h_s VMEM-resident when (with double buffering) it stays well
    # inside the v7x 32 MiB scoped limit; otherwise stream bf16 chunks.
    resident = 2 * n_pad * f_pad * 2 <= 12 * 1024 * 1024
    if resident:
        h_spec = pl.BlockSpec((n_pad, f_pad), lambda i, k: (0, 0))
        h_bytes = n_pad * f_pad * 2
    else:
        h_spec = pl.BlockSpec((tile, f_pad), lambda i, k: (k, 0))
        h_bytes = row_tiles * n_pad * f_pad * 2

    out_p = pl.pallas_call(
        functools.partial(aggregate_kernel, tile=tile, resident=resident),
        out_shape=jax.ShapeDtypeStruct((n_pad, f_pad), jnp.float32),
        grid_spec=pltpu.PrefetchScalarGridSpec(
            num_scalar_prefetch=0,
            grid=(row_tiles, row_tiles),
            in_specs=[
                pl.BlockSpec((tile, tile), lambda i, k: (i, k)),     # A tile
                h_spec,                                              # h_s
                pl.BlockSpec((tile, 1), lambda i, k: (i, 0)),        # d_inv rows
            ],
            out_specs=pl.BlockSpec((tile, f_pad), lambda i, k: (i, 0)),
            scratch_shapes=[pltpu.VMEM((tile, f_pad), jnp.float32)],
        ),
        compiler_params=cparams,
        cost_estimate=pl.CostEstimate(
            flops=2 * n_pad * n_pad * f_pad,
            transcendentals=0,
            bytes_accessed=n_pad * n_pad * 2 + h_bytes
            + n_pad * 4 + n_pad * f_pad * 4),
    )(g_p, h_scaled, d_inv)

    return out_p[:n, :f]


def reference(x, graph, weight, bias):
    n = graph.shape[0]
    a_hat = graph + jnp.eye(n, dtype=jnp.float32)
    d_inv = jax.lax.rsqrt(jnp.sum(a_hat, axis=1, keepdims=True))
    a_norm = d_inv * a_hat * d_inv.T
    h = x @ weight + bias
    return jnp.maximum(a_norm @ h, 0.0)


if __name__ == "__main__":
    # Small shapes implied by forward(x[N, M], graph[N, N]).
    N, M, F = 8, 32, 16

    key = jax.random.PRNGKey(0)
    kx, kg, kw = jax.random.split(key, 3)

    x = jax.random.normal(kx, (N, M), dtype=jnp.float32)

    # Non-negative edge weights; self-loops are added inside the kernels.
    graph = jnp.where(
        jax.random.uniform(kg, (N, N)) > 0.5,
        jax.random.uniform(kg, (N, N), minval=0.5, maxval=2.0),
        0.0,
    ).astype(jnp.float32)

    # Deterministic GCN parameter init (Xavier-uniform weight, zero bias),
    # matching the shapes created in GCN.__init__.
    limit = (6.0 / (M + F)) ** 0.5
    weight = jax.random.uniform(kw, (M, F), minval=-limit, maxval=limit,
                                dtype=jnp.float32)
    bias = jnp.zeros((1, F), dtype=jnp.float32)

    out = msg_pass_module(x, graph, weight, bias)
    jax.block_until_ready(out)

    ref = reference(x, graph, weight, bias)
    assert out.shape == (N, F)
    # bf16 adjacency + bf16 h_s (f32 accumulation everywhere) => relaxed
    # tolerance against the pure-f32 reference.
    assert jnp.allclose(out, ref, atol=3e-2, rtol=3e-2), float(
        jnp.max(jnp.abs(out - ref)))

    print("KERNEL_OK")
</pallas_src>

<mosaic_0001>
module attributes {stable_mosaic.version = 11 : i64} {
  func.func @linear_degree_kernel(%arg0: i32, %arg1: i32, %arg2: memref<128x128xbf16, #tpu.memory_space<vmem>>, %arg3: memref<128x128xf32, #tpu.memory_space<vmem>>, %arg4: memref<128x128xf32, #tpu.memory_space<vmem>>, %arg5: memref<1x128xf32, #tpu.memory_space<vmem>>, %arg6: memref<128x128xbf16, #tpu.memory_space<vmem>>, %arg7: memref<128x1xf32, #tpu.memory_space<vmem>>, %arg8: memref<128x1xf32, #tpu.memory_space<vmem>>) attributes {dimension_semantics = [#tpu.dimension_semantics<parallel>, #tpu.dimension_semantics<arbitrary>], iteration_bounds = array<i64: 1, 1>, scalar_prefetch = 0 : i64, scratch_operands = 1 : i64, tpu.core_type = #tpu.core_type<tc>, window_params = [{transform_indices = @transform_0, window_bounds = array<i64: 128, 128>}, {transform_indices = @transform_1, window_bounds = array<i64: 128, 128>}, {pipeline_mode = #tpu.pipeline_mode<synchronous>, transform_indices = @transform_2, window_bounds = array<i64: 128, 128>}, {pipeline_mode = #tpu.pipeline_mode<synchronous>, transform_indices = @transform_3, window_bounds = array<i64: 1, 128>}, {transform_indices = @transform_4, window_bounds = array<i64: 128, 128>}, {transform_indices = @transform_5, window_bounds = array<i64: 128, 1>}]} {
    %c0_i32 = arith.constant 0 : i32
    %0 = arith.cmpi eq, %arg1, %c0_i32 : i32
    %1 = arith.extui %0 : i1 to i32
    %c0_i32_0 = arith.constant 0 : i32
    %2 = arith.cmpi ne, %1, %c0_i32_0 : i32
    scf.if %2 {
      %cst_8 = arith.constant 0.000000e+00 : f32
      %13 = vector.broadcast %cst_8 : f32 to vector<128x1xf32>
      %c0_9 = arith.constant 0 : index
      %c0_10 = arith.constant 0 : index
      %14 = vector.load %arg8[%c0_9, %c0_10] : memref<128x1xf32, #tpu.memory_space<vmem>>, vector<128x1xf32>
      tpu.vector_store %arg8[%c0_9, %c0_10], %13 {strides = array<i32>} : memref<128x1xf32, #tpu.memory_space<vmem>>, vector<128x1xf32>,
    } else {
    }
    %c0 = arith.constant 0 : index
    %c0_1 = arith.constant 0 : index
    %3 = vector.load %arg8[%c0, %c0_1] : memref<128x1xf32, #tpu.memory_space<vmem>>, vector<128x1xf32>
    %c0_2 = arith.constant 0 : index
    %c0_3 = arith.constant 0 : index
    %4 = vector.load %arg2[%c0_2, %c0_3] : memref<128x128xbf16, #tpu.memory_space<vmem>>, vector<128x128xbf16>
    %5 = arith.extf %4 : vector<128x128xbf16> to vector<128x128xf32>
    %cst = arith.constant dense<0.000000e+00> : vector<128xf32>
    %6 = vector.multi_reduction <add>, %5, %cst [1] : vector<128x128xf32> to vector<128xf32>
    %7 = vector.shape_cast %6 : vector<128xf32> to vector<128x1xf32>
    %8 = arith.addf %3, %7 : vector<128x1xf32>
    %c0_4 = arith.constant 0 : index
    %c0_5 = arith.constant 0 : index
    %9 = vector.load %arg8[%c0_4, %c0_5] : memref<128x1xf32, #tpu.memory_space<vmem>>, vector<128x1xf32>
    tpu.vector_store %arg8[%c0_4, %c0_5], %8 {strides = array<i32>} : memref<128x1xf32, #tpu.memory_space<vmem>>, vector<128x1xf32>,
    %c0_i32_6 = arith.constant 0 : i32
    %10 = arith.cmpi eq, %arg1, %c0_i32_6 : i32
    %11 = arith.extui %10 : i1 to i32
    %c0_i32_7 = arith.constant 0 : i32
    %12 = arith.cmpi ne, %11, %c0_i32_7 : i32
    scf.if %12 {
      %c0_8 = arith.constant 0 : index
      %c0_9 = arith.constant 0 : index
      %13 = vector.load %arg8[%c0_8, %c0_9] : memref<128x1xf32, #tpu.memory_space<vmem>>, vector<128x1xf32>
      %cst_10 = arith.constant 1.000000e+00 : f32
      %14 = vector.broadcast %cst_10 : f32 to vector<128x1xf32>
      %15 = arith.addf %13, %14 : vector<128x1xf32>
      %16 = math.rsqrt %15 : vector<128x1xf32>
      %c0_11 = arith.constant 0 : index
      %c0_12 = arith.constant 0 : index
      %17 = vector.load %arg3[%c0_11, %c0_12] : memref<128x128xf32, #tpu.memory_space<vmem>>, vector<128x128xf32>
      %c0_13 = arith.constant 0 : index
      %c0_14 = arith.constant 0 : index
      %18 = vector.load %arg4[%c0_13, %c0_14] : memref<128x128xf32, #tpu.memory_space<vmem>>, vector<128x128xf32>
      %cst_15 = arith.constant dense<0.000000e+00> : vector<128x128xf32>
      %19 = tpu.matmul %17, %18, %cst_15 {dimension_numbers = #tpu.dot_dimension_numbers<[1], [0], [0], [1], [0, 0, 1, 1], [], []>} : vector<128x128xf32>, vector<128x128xf32>, vector<128x128xf32> -> vector<128x128xf32>
      %c0_16 = arith.constant 0 : index
      %c0_17 = arith.constant 0 : index
      %20 = vector.load %arg5[%c0_16, %c0_17] : memref<1x128xf32, #tpu.memory_space<vmem>>, vector<1x128xf32>
      %21 = vector.broadcast %20 : vector<1x128xf32> to vector<128x128xf32>
      %22 = arith.addf %19, %21 : vector<128x128xf32>
      %23 = vector.broadcast %16 : vector<128x1xf32> to vector<128x128xf32>
      %24 = arith.mulf %22, %23 : vector<128x128xf32>
      %25 = arith.truncf %24 : vector<128x128xf32> to vector<128x128xbf16>
      %c0_18 = arith.constant 0 : index
      %c0_19 = arith.constant 0 : index
      %26 = vector.load %arg6[%c0_18, %c0_19] : memref<128x128xbf16, #tpu.memory_space<vmem>>, vector<128x128xbf16>
      tpu.vector_store %arg6[%c0_18, %c0_19], %25 {strides = array<i32>} : memref<128x128xbf16, #tpu.memory_space<vmem>>, vector<128x128xbf16>,
      %c0_20 = arith.constant 0 : index
      %c0_21 = arith.constant 0 : index
      %27 = vector.load %arg7[%c0_20, %c0_21] : memref<128x1xf32, #tpu.memory_space<vmem>>, vector<128x1xf32>
      tpu.vector_store %arg7[%c0_20, %c0_21], %16 {strides = array<i32>} : memref<128x1xf32, #tpu.memory_space<vmem>>, vector<128x1xf32>,
    } else {
    }
    return
  }
  func.func @transform_0(%arg0: i32, %arg1: i32) -> (i32, i32) {
    %c0_i32 = arith.constant 0 : i32
    return %arg0, %arg1 : i32, i32
  }
  func.func @transform_1(%arg0: i32, %arg1: i32) -> (i32, i32) {
    %c0_i32 = arith.constant 0 : i32
    %c0_i32_0 = arith.constant 0 : i32
    return %arg0, %c0_i32 : i32, i32
  }
  func.func @transform_2(%arg0: i32, %arg1: i32) -> (i32, i32) {
    %c0_i32 = arith.constant 0 : i32
    %c0_i32_0 = arith.constant 0 : i32
    %c0_i32_1 = arith.constant 0 : i32
    return %c0_i32, %c0_i32_0 : i32, i32
  }
  func.func @transform_3(%arg0: i32, %arg1: i32) -> (i32, i32) {
    %c0_i32 = arith.constant 0 : i32
    %c0_i32_0 = arith.constant 0 : i32
    %c0_i32_1 = arith.constant 0 : i32
    return %c0_i32, %c0_i32_0 : i32, i32
  }
  func.func @transform_4(%arg0: i32, %arg1: i32) -> (i32, i32) {
    %c0_i32 = arith.constant 0 : i32
    %c0_i32_0 = arith.constant 0 : i32
    return %arg0, %c0_i32 : i32, i32
  }
  func.func @transform_5(%arg0: i32, %arg1: i32) -> (i32, i32) {
    %c0_i32 = arith.constant 0 : i32
    %c0_i32_0 = arith.constant 0 : i32
    return %arg0, %c0_i32 : i32, i32
  }
}

module attributes {stable_mosaic.version = 11 : i64} {
  func.func @aggregate_kernel(%arg0: i32, %arg1: i32, %arg2: memref<128x128xbf16, #tpu.memory_space<vmem>>, %arg3: memref<128x128xbf16, #tpu.memory_space<vmem>>, %arg4: memref<128x1xf32, #tpu.memory_space<vmem>>, %arg5: memref<128x128xf32, #tpu.memory_space<vmem>>, %arg6: memref<128x128xf32, #tpu.memory_space<vmem>>) attributes {dimension_semantics = [#tpu.dimension_semantics<parallel>, #tpu.dimension_semantics<arbitrary>], iteration_bounds = array<i64: 1, 1>, scalar_prefetch = 0 : i64, scratch_operands = 1 : i64, tpu.core_type = #tpu.core_type<tc>, window_params = [{transform_indices = @transform_0, window_bounds = array<i64: 128, 128>}, {pipeline_mode = #tpu.pipeline_mode<synchronous>, transform_indices = @transform_1, window_bounds = array<i64: 128, 128>}, {transform_indices = @transform_2, window_bounds = array<i64: 128, 1>}, {transform_indices = @transform_3, window_bounds = array<i64: 128, 128>}]} {
    %c0_i32 = arith.constant 0 : i32
    %0 = arith.cmpi eq, %arg1, %c0_i32 : i32
    %1 = arith.extui %0 : i1 to i32
    %c0_i32_0 = arith.constant 0 : i32
    %2 = arith.cmpi ne, %1, %c0_i32_0 : i32
    scf.if %2 {
      %cst_10 = arith.constant 0.000000e+00 : f32
      %18 = vector.broadcast %cst_10 : f32 to vector<128x128xf32>
      %c0_11 = arith.constant 0 : index
      %c0_12 = arith.constant 0 : index
      %19 = vector.load %arg6[%c0_11, %c0_12] : memref<128x128xf32, #tpu.memory_space<vmem>>, vector<128x128xf32>
      tpu.vector_store %arg6[%c0_11, %c0_12], %18 {strides = array<i32>} : memref<128x128xf32, #tpu.memory_space<vmem>>, vector<128x128xf32>,
    } else {
    }
    %c128_i32 = arith.constant 128 : i32
    %3 = arith.muli %arg1, %c128_i32 : i32
    %4 = tpu.assume_multiple %3, 128 : i32
    %5 = arith.index_cast %4 : i32 to index
    %c0 = arith.constant 0 : index
    %6 = vector.load %arg3[%5, %c0] : memref<128x128xbf16, #tpu.memory_space<vmem>>, vector<128x128xbf16>
    %c0_1 = arith.constant 0 : index
    %c0_2 = arith.constant 0 : index
    %7 = vector.load %arg6[%c0_1, %c0_2] : memref<128x128xf32, #tpu.memory_space<vmem>>, vector<128x128xf32>
    %c0_3 = arith.constant 0 : index
    %c0_4 = arith.constant 0 : index
    %8 = vector.load %arg2[%c0_3, %c0_4] : memref<128x128xbf16, #tpu.memory_space<vmem>>, vector<128x128xbf16>
    %cst = arith.constant dense<0.000000e+00> : vector<128x128xf32>
    %9 = tpu.matmul %8, %6, %cst {dimension_numbers = #tpu.dot_dimension_numbers<[1], [0], [0], [1], [0, 0, 1, 1], [], []>} : vector<128x128xbf16>, vector<128x128xbf16>, vector<128x128xf32> -> vector<128x128xf32>
    %10 = arith.addf %7, %9 : vector<128x128xf32>
    %c0_5 = arith.constant 0 : index
    %c0_6 = arith.constant 0 : index
    %11 = vector.load %arg6[%c0_5, %c0_6] : memref<128x128xf32, #tpu.memory_space<vmem>>, vector<128x128xf32>
    tpu.vector_store %arg6[%c0_5, %c0_6], %10 {strides = array<i32>} : memref<128x128xf32, #tpu.memory_space<vmem>>, vector<128x128xf32>,
    %12 = arith.cmpi eq, %arg1, %arg0 : i32
    %13 = arith.extui %12 : i1 to i32
    %c0_i32_7 = arith.constant 0 : i32
    %14 = arith.cmpi ne, %13, %c0_i32_7 : i32
    scf.if %14 {
      %c0_10 = arith.constant 0 : index
      %c0_11 = arith.constant 0 : index
      %18 = vector.load %arg6[%c0_10, %c0_11] : memref<128x128xf32, #tpu.memory_space<vmem>>, vector<128x128xf32>
      %19 = arith.extf %6 : vector<128x128xbf16> to vector<128x128xf32>
      %20 = arith.addf %18, %19 : vector<128x128xf32>
      %c0_12 = arith.constant 0 : index
      %c0_13 = arith.constant 0 : index
      %21 = vector.load %arg6[%c0_12, %c0_13] : memref<128x128xf32, #tpu.memory_space<vmem>>, vector<128x128xf32>
      tpu.vector_store %arg6[%c0_12, %c0_13], %20 {strides = array<i32>} : memref<128x128xf32, #tpu.memory_space<vmem>>, vector<128x128xf32>,
    } else {
    }
    %c0_i32_8 = arith.constant 0 : i32
    %15 = arith.cmpi eq, %arg1, %c0_i32_8 : i32
    %16 = arith.extui %15 : i1 to i32
    %c0_i32_9 = arith.constant 0 : i32
    %17 = arith.cmpi ne, %16, %c0_i32_9 : i32
    scf.if %17 {
      %c0_10 = arith.constant 0 : index
      %c0_11 = arith.constant 0 : index
      %18 = vector.load %arg6[%c0_10, %c0_11] : memref<128x128xf32, #tpu.memory_space<vmem>>, vector<128x128xf32>
      %c0_12 = arith.constant 0 : index
      %c0_13 = arith.constant 0 : index
      %19 = vector.load %arg4[%c0_12, %c0_13] : memref<128x1xf32, #tpu.memory_space<vmem>>, vector<128x1xf32>
      %20 = vector.broadcast %19 : vector<128x1xf32> to vector<128x128xf32>
      %21 = arith.mulf %18, %20 : vector<128x128xf32>
      %cst_14 = arith.constant 0.000000e+00 : f32
      %22 = vector.broadcast %cst_14 : f32 to vector<128x128xf32>
      %23 = arith.maximumf %21, %22 : vector<128x128xf32>
      %c0_15 = arith.constant 0 : index
      %c0_16 = arith.constant 0 : index
      %24 = vector.load %arg5[%c0_15, %c0_16] : memref<128x128xf32, #tpu.memory_space<vmem>>, vector<128x128xf32>
      tpu.vector_store %arg5[%c0_15, %c0_16], %23 {strides = array<i32>} : memref<128x128xf32, #tpu.memory_space<vmem>>, vector<128x128xf32>,
    } else {
    }
    return
  }
  func.func @transform_0(%arg0: i32, %arg1: i32) -> (i32, i32) {
    %c0_i32 = arith.constant 0 : i32
    return %arg0, %arg1 : i32, i32
  }
  func.func @transform_1(%arg0: i32, %arg1: i32) -> (i32, i32) {
    %c0_i32 = arith.constant 0 : i32
    %c0_i32_0 = arith.constant 0 : i32
    %c0_i32_1 = arith.constant 0 : i32
    return %c0_i32, %c0_i32_0 : i32, i32
  }
  func.func @transform_2(%arg0: i32, %arg1: i32) -> (i32, i32) {
    %c0_i32 = arith.constant 0 : i32
    %c0_i32_0 = arith.constant 0 : i32
    return %arg0, %c0_i32 : i32, i32
  }
  func.func @transform_3(%arg0: i32, %arg1: i32) -> (i32, i32) {
    %c0_i32 = arith.constant 0 : i32
    %c0_i32_0 = arith.constant 0 : i32
    return %arg0, %c0_i32 : i32, i32
  }
}

</mosaic_0001>

<bundles_post_ra>
// kernel: msg_pass_module.2
= control target key start
LH: loop header
LB: loop body
LE: loop exit
PB: predicated region body
PF: predicated region fallthrough
CT: control target
= control target key end

     0   :  { %vm23_vm0 = vcmask 7168   ;;  %v879_v2 = vmov 0.0   ;;  %v880_v55 = vmov 0   ;;  %s1154_s0 = inlined_call_operand.vmem [shape: bf16[128,128], index: 0, kind: input, shape index: {}]   ;;  %s1155_s2 = inlined_call_operand.vmem [shape: f32[128,128], index: 2, kind: input, shape index: {}]   ;;  %s1156_s1 = inlined_call_operand.vmem [shape: f32[128,128], index: 1, kind: input, shape index: {}]   ;;  %s1157_s5 = inlined_call_operand.vmem [shape: f32[128,1], index: 5, kind: output, shape index: {1}]   ;;  %s1158_s3 = inlined_call_operand.vmem [shape: f32[1,128], index: 3, kind: input, shape index: {}]   ;;  %s1159_s4 = inlined_call_operand.vmem [shape: bf16[128,128], index: 4, kind: output, shape index: {0}]  }
   0x1   :  { %v693_v0 = vld [vmem:[%s1154_s0 + $0x8] sm:$0xff]   ;;  %v622_v1 = vld [vmem:[%s1154_s0] sm:$0xff]   ;;  %26 = vst.msk [vmem:[#allocation2 + $0x10] sm:$0xff] %vm23_vm0, %v879_v2  ;;  %24 = vst.msk [vmem:[#allocation2] sm:$0xff] %vm23_vm0, %v879_v2  ;;  %845 = vset.pattern.permute.xlu0 %v880_v55  ;;  %846 = vset.pattern.permute.xlu1 %v880_v55 }
   0x2   :  { %25 = vst.msk [vmem:[#allocation2 + $0x8] sm:$0xff] %vm23_vm0, %v879_v2  ;;  %27 = vst.msk [vmem:[#allocation2 + $0x18] sm:$0xff] %vm23_vm0, %v879_v2  ;;  %v627_v3 = vunpack.c.l.bf16 %v693_v0  ;;  %v623_v4 = vunpack.c.l.bf16 %v622_v1  ;;  %v220_v5 = vld [vmem:[%s1155_s2] sm:$0xff]  ;;  %v628_v6 = vunpack.c.h.bf16 %v693_v0  ;;  %v624_v7 = vunpack.c.h.bf16 %v622_v1  ;;  %v221_v8 = vld [vmem:[%s1155_s2 + $0x8] sm:$0xff] }
   0x3   :  { %28 = vst.msk [vmem:[#allocation2 + $0x20] sm:$0xff] %vm23_vm0, %v879_v2  ;;  %29 = vst.msk [vmem:[#allocation2 + $0x28] sm:$0xff] %vm23_vm0, %v879_v2  ;;  %v222_v9 = vld [vmem:[%s1155_s2 + $0x10] sm:$0xff]  ;;  %v223_v10 = vld [vmem:[%s1155_s2 + $0x18] sm:$0xff]  ;;  %v795_v12 = vpack.c.bf16 %v221_v8, %v220_v5 }
   0x4   :  { %30 = vst.msk [vmem:[#allocation2 + $0x30] sm:$0xff] %vm23_vm0, %v879_v2  ;;  %31 = vst.msk [vmem:[#allocation2 + $0x38] sm:$0xff] %vm23_vm0, %v879_v2  ;;  %92 = vadd.xlane.f32.xlu1 %v627_v3  ;;  %88 = vadd.xlane.f32.xlu0 %v623_v4  ;;  %v694_v11 = vld [vmem:[%s1154_s0 + $0x10] sm:$0xff]   ;;  %v799_v13 = vpack.c.bf16 %v223_v10, %v222_v9  ;;  %v224_v16 = vld [vmem:[%s1155_s2 + $0x20] sm:$0xff] }
   0x5   :  { %32 = vst.msk [vmem:[#allocation2 + $0x40] sm:$0xff] %vm23_vm0, %v879_v2  ;;  %33 = vst.msk [vmem:[#allocation2 + $0x48] sm:$0xff] %vm23_vm0, %v879_v2  ;;  %v632_v14 = vunpack.c.h.bf16 %v694_v11  ;;  %v631_v15 = vunpack.c.l.bf16 %v694_v11  ;;  %v225_v17 = vld [vmem:[%s1155_s2 + $0x28] sm:$0xff]  ;;  %v695_v18 = vld [vmem:[%s1154_s0 + $0x18] sm:$0xff]   ;;  %796 = vmatprep.subr.bf16.mxu0 %v795_v12  ;;  %827 = vmatprep.subr.bf16.mxu1 %v795_v12 }
   0x6   :  { %34 = vst.msk [vmem:[#allocation2 + $0x50] sm:$0xff] %vm23_vm0, %v879_v2  ;;  %35 = vst.msk [vmem:[#allocation2 + $0x58] sm:$0xff] %vm23_vm0, %v879_v2  ;;  %798 = vmatpush3.bf16.msra.mxu0 %v795_v12  ;;  %835 = vmatpush3.bf16.msra.mxu1 %v795_v12  ;;  %v204_v19 = vld [vmem:[%s1156_s1] sm:$0xff]  ;;  %v803_v20 = vpack.c.bf16 %v225_v17, %v224_v16  ;;  %v636_v22 = vunpack.c.h.bf16 %v695_v18  ;;  %v635_v23 = vunpack.c.l.bf16 %v695_v18  ;;  %v226_v24 = vld [vmem:[%s1155_s2 + $0x30] sm:$0xff] }
   0x7   :  { %36 = vst.msk [vmem:[#allocation2 + $0x60] sm:$0xff] %vm23_vm0, %v879_v2  ;;  %37 = vst.msk [vmem:[#allocation2 + $0x68] sm:$0xff] %vm23_vm0, %v879_v2  ;;  %800 = vmatprep.subr.bf16.mxu0 %v799_v13  ;;  %828 = vmatprep.subr.bf16.mxu1 %v799_v13  ;;  %v212_v21 = vld [vmem:[%s1156_s1 + $0x40] sm:$0xff]  ;;  %v227_v25 = vld [vmem:[%s1155_s2 + $0x38] sm:$0xff] }
   0x8   :  { %38 = vst.msk [vmem:[#allocation2 + $0x70] sm:$0xff] %vm23_vm0, %v879_v2  ;;  %39 = vst.msk [vmem:[#allocation2 + $0x78] sm:$0xff] %vm23_vm0, %v879_v2  ;;  %94 = vadd.xlane.f32.xlu1 %v628_v6  ;;  %90 = vadd.xlane.f32.xlu0 %v624_v7  ;;  %v696_v26 = vld [vmem:[%s1154_s0 + $0x20] sm:$0xff]   ;;  %v807_v27 = vpack.c.bf16 %v227_v25, %v226_v24  ;;  %v229_v31 = vld [vmem:[%s1155_s2 + $0x48] sm:$0xff] }
   0x9   :  { %771 = vmatprep.mubr.f32.mxu0 %v204_v19  ;;  %783 = vmatprep.mubr.f32.mxu1 %v212_v21  ;;  %v640_v28 = vunpack.c.h.bf16 %v696_v26  ;;  %v639_v29 = vunpack.c.l.bf16 %v696_v26  ;;  %v228_v30 = vld [vmem:[%s1155_s2 + $0x40] sm:$0xff]  ;;  %v697_v32 = vld [vmem:[%s1154_s0 + $0x28] sm:$0xff]   ;;  %v230_v36 = vld [vmem:[%s1155_s2 + $0x50] sm:$0xff] }
   0xa   :  { %802 = vmatpush3.bf16.msra.mxu0 %v799_v13  ;;  %836 = vmatpush3.bf16.msra.mxu1 %v799_v13  ;;  %v811_v33 = vpack.c.bf16 %v229_v31, %v228_v30  ;;  %v644_v34 = vunpack.c.h.bf16 %v697_v32  ;;  %v643_v35 = vunpack.c.l.bf16 %v697_v32  ;;  %v231_v37 = vld [vmem:[%s1155_s2 + $0x58] sm:$0xff]  ;;  %v698_v38 = vld [vmem:[%s1154_s0 + $0x30] sm:$0xff]   ;;  %v232_v42 = vld [vmem:[%s1155_s2 + $0x60] sm:$0xff] }
   0xb   :  { %804 = vmatprep.subr.bf16.mxu0 %v803_v20  ;;  %829 = vmatprep.subr.bf16.mxu1 %v803_v20  ;;  %v815_v39 = vpack.c.bf16 %v231_v37, %v230_v36  ;;  %v648_v40 = vunpack.c.h.bf16 %v698_v38  ;;  %v647_v41 = vunpack.c.l.bf16 %v698_v38  ;;  %v233_v43 = vld [vmem:[%s1155_s2 + $0x68] sm:$0xff]  ;;  %v699_v44 = vld [vmem:[%s1154_s0 + $0x38] sm:$0xff]   ;;  %v234_v48 = vld [vmem:[%s1155_s2 + $0x70] sm:$0xff] }
   0xc   :  { %98 = vadd.xlane.f32.xlu1 %v632_v14  ;;  %96 = vadd.xlane.f32.xlu0 %v631_v15  ;;  %v819_v45 = vpack.c.bf16 %v233_v43, %v232_v42  ;;  %v652_v46 = vunpack.c.h.bf16 %v699_v44  ;;  %v651_v47 = vunpack.c.l.bf16 %v699_v44  ;;  %v235_v49 = vld [vmem:[%s1155_s2 + $0x78] sm:$0xff]  ;;  %v205_v51 = vld [vmem:[%s1156_s1 + $0x8] sm:$0xff]  ;;  %v206_v53 = vld [vmem:[%s1156_s1 + $0x10] sm:$0xff] }
   0xd   :  { %v823_v50 = vpack.c.bf16 %v235_v49, %v234_v48  ;;  %v213_v52 = vld [vmem:[%s1156_s1 + $0x48] sm:$0xff]  ;;  %v214_v54 = vld [vmem:[%s1156_s1 + $0x50] sm:$0xff]  ;;  %v207_v56 = vld [vmem:[%s1156_s1 + $0x18] sm:$0xff] }
   0xe   :  { %806 = vmatpush3.bf16.msra.mxu0 %v803_v20  ;;  %837 = vmatpush3.bf16.msra.mxu1 %v803_v20  ;;  %v215_v57 = vld [vmem:[%s1156_s1 + $0x58] sm:$0xff]  ;;  %v208_v58 = vld [vmem:[%s1156_s1 + $0x20] sm:$0xff]  ;;  %v209_v60 = vld [vmem:[%s1156_s1 + $0x28] sm:$0xff] }
   0xf   :  { %808 = vmatprep.subr.bf16.mxu0 %v807_v27  ;;  %830 = vmatprep.subr.bf16.mxu1 %v807_v27  ;;  %v216_v59 = vld [vmem:[%s1156_s1 + $0x60] sm:$0xff]  ;;  %v217_v61 = vld [vmem:[%s1156_s1 + $0x68] sm:$0xff]  ;;  %v210_v62 = vld [vmem:[%s1156_s1 + $0x30] sm:$0xff] }
  0x10   :  { %102 = vadd.xlane.f32.xlu1 %v636_v22  ;;  %100 = vadd.xlane.f32.xlu0 %v635_v23  ;;  %v218_v63 = vld [vmem:[%s1156_s1 + $0x70] sm:$0xff]  ;;  %v211_v0 = vld [vmem:[%s1156_s1 + $0x38] sm:$0xff]  ;;  %v40_v3 = vld [vmem:[#allocation2] sm:$0xff] }
  0x11   :  { %v219_v1 = vld [vmem:[%s1156_s1 + $0x78] sm:$0xff]  ;;  %v42_v2 = vld [vmem:[#allocation2 + $0x10] sm:$0xff]  ;;  %v41_v9 = vld [vmem:[#allocation2 + $0x8] sm:$0xff] }
  0x12   :  { %810 = vmatpush3.bf16.msra.mxu0 %v807_v27  ;;  %838 = vmatpush3.bf16.msra.mxu1 %v807_v27  ;;  %v43_v8 = vld [vmem:[#allocation2 + $0x18] sm:$0xff]  ;;  %v45_v14 = vld [vmem:[#allocation2 + $0x28] sm:$0xff]  ;;  %v44_v15 = vld [vmem:[#allocation2 + $0x20] sm:$0xff] }
  0x13   :  { %812 = vmatprep.subr.bf16.mxu0 %v811_v33  ;;  %831 = vmatprep.subr.bf16.mxu1 %v811_v33  ;;  %v47_v19 = vld [vmem:[#allocation2 + $0x38] sm:$0xff]  ;;  %v46_v22 = vld [vmem:[#allocation2 + $0x30] sm:$0xff]  ;;  %v48_v32 = vld [vmem:[#allocation2 + $0x40] sm:$0xff] }
  0x14   :  { %106 = vadd.xlane.f32.xlu1 %v640_v28  ;;  %104 = vadd.xlane.f32.xlu0 %v639_v29  ;;  %v49_v29 = vld [vmem:[#allocation2 + $0x48] sm:$0xff] }
  0x15   :  { %v53_v49 = vld [vmem:[#allocation2 + $0x68] sm:$0xff] }
  0x16   :  { %814 = vmatpush3.bf16.msra.mxu0 %v811_v33  ;;  %839 = vmatpush3.bf16.msra.mxu1 %v811_v33 }
  0x17   :  { %816 = vmatprep.subr.bf16.mxu0 %v815_v39  ;;  %832 = vmatprep.subr.bf16.mxu1 %v815_v39 }
  0x18   :  { %110 = vadd.xlane.f32.xlu1 %v644_v34  ;;  %108 = vadd.xlane.f32.xlu0 %v643_v35 }
  0x1a   :  { %818 = vmatpush3.bf16.msra.mxu0 %v815_v39  ;;  %840 = vmatpush3.bf16.msra.mxu1 %v815_v39  ;;  %v51_v39 = vld [vmem:[#allocation2 + $0x58] sm:$0xff] }
  0x1b   :  { %820 = vmatprep.subr.bf16.mxu0 %v819_v45  ;;  %833 = vmatprep.subr.bf16.mxu1 %v819_v45 }
  0x1c   :  { %114 = vadd.xlane.f32.xlu1 %v648_v40  ;;  %112 = vadd.xlane.f32.xlu0 %v647_v41  ;;  %v50_v41 = vld [vmem:[#allocation2 + $0x50] sm:$0xff] }
  0x1e   :  { %822 = vmatpush3.bf16.msra.mxu0 %v819_v45  ;;  %841 = vmatpush3.bf16.msra.mxu1 %v819_v45 }
  0x1f   :  { %824 = vmatprep.subr.bf16.mxu0 %v823_v50  ;;  %834 = vmatprep.subr.bf16.mxu1 %v823_v50 }
  0x20   :  { %118 = vadd.xlane.f32.xlu1 %v652_v46  ;;  %116 = vadd.xlane.f32.xlu0 %v651_v47 }
  0x22   :  { %826 = vmatpush3.bf16.msra.mxu0 %v823_v50  ;;  %842 = vmatpush3.bf16.msra.mxu1 %v823_v50 }
  0x25   :  { %772 = vmatmul.mubr.f32.vlgmr.msra.gmra.mrb[0].mxu0 %v205_v51  ;;  %784 = vmatmul.mubr.f32.vlgmr.msra.gmra.mrb[0].mxu1 %v213_v52  ;;  %v52_v51 = vld [vmem:[#allocation2 + $0x60] sm:$0xff] }
  0x26   :  { %774 = vmatprep.mubr.f32.mxu0 %v206_v53  ;;  %786 = vmatprep.mubr.f32.mxu1 %v214_v54 }
  0x29   :  { %775 = vmatmul.mubr.f32.gmra.mrb[2].mxu0 %v207_v56  ;;  %787 = vmatmul.mubr.f32.gmra.mrb[2].mxu1 %v215_v57 }
  0x2a   :  { %777 = vmatprep.mubr.f32.mxu0 %v208_v58  ;;  %789 = vmatprep.mubr.f32.mxu1 %v216_v59 }
  0x2d   :  { %778 = vmatmul.mubr.f32.gmra.mrb[4].mxu0 %v209_v60  ;;  %790 = vmatmul.mubr.f32.gmra.mrb[4].mxu1 %v217_v61  ;;  %v55_v61 = vld [vmem:[#allocation2 + $0x78] sm:$0xff] }
  0x2e   :  { %780 = vmatprep.mubr.f32.mxu0 %v210_v62  ;;  %792 = vmatprep.mubr.f32.mxu1 %v218_v63 }
  0x31   :  { %781 = vmatmul.mubr.f32.gmra.mrb[6].mxu0 %v211_v0  ;;  %793 = vmatmul.mubr.f32.gmra.mrb[6].mxu1 %v219_v1  ;;  %v54_v0 = vld [vmem:[#allocation2 + $0x70] sm:$0xff] }
  0x91   :  { %v93_v4 = vpop.xlane.xlu1 %92  ;;  %v89_v5 = vpop.xlane.xlu0 %88 }
  0x92   :  { %v122_v6 = vadd.f32 %v93_v4, %v42_v2  ;;  %v120_v7 = vadd.f32 %v89_v5, %v40_v3 }
  0x94   :  { %139 = vst.msk [vmem:[#allocation2 + $0x10] sm:$0xff] %vm23_vm0, %v122_v6  ;;  %137 = vst.msk [vmem:[#allocation2] sm:$0xff] %vm23_vm0, %v120_v7 }
  0x95   :  { %v95_v10 = vpop.xlane.xlu1 %94  ;;  %v91_v11 = vpop.xlane.xlu0 %90 }
  0x96   :  { %v123_v12 = vadd.f32 %v95_v10, %v43_v8  ;;  %v121_v13 = vadd.f32 %v91_v11, %v41_v9 }
  0x98   :  { %140 = vst.msk [vmem:[#allocation2 + $0x18] sm:$0xff] %vm23_vm0, %v123_v12  ;;  %138 = vst.msk [vmem:[#allocation2 + $0x8] sm:$0xff] %vm23_vm0, %v121_v13 }
  0x99   :  { %v99_v16 = vpop.xlane.xlu1 %98  ;;  %v97_v17 = vpop.xlane.xlu0 %96 }
  0x9a   :  { %v125_v18 = vadd.f32 %v99_v16, %v45_v14  ;;  %v124_v20 = vadd.f32 %v97_v17, %v44_v15 }
  0x9b   :  { %v156_v21 = vld [vmem:[#allocation2] sm:$0xff]  ;;  %v158_v23 = vld [vmem:[#allocation2 + $0x10] sm:$0xff] }
  0x9c   :  { %142 = vst.msk [vmem:[#allocation2 + $0x28] sm:$0xff] %vm23_vm0, %v125_v18  ;;  %141 = vst.msk [vmem:[#allocation2 + $0x20] sm:$0xff] %vm23_vm0, %v124_v20  ;;  %v172_v24 = vadd.f32 1.0, %v156_v21  ;;  %v174_v25 = vadd.f32 1.0, %v158_v23 }
  0x9d   :  { %v103_v26 = vpop.xlane.xlu1 %102  ;;  %v101_v27 = vpop.xlane.xlu0 %100 }
  0x9e   :  { %v127_v28 = vadd.f32 %v103_v26, %v47_v19  ;;  %847 = vrsqrt.f32 %v172_v24  ;;  %v126_v30 = vadd.f32 %v101_v27, %v46_v22 }
  0x9f   :  { %v157_v31 = vld [vmem:[#allocation2 + $0x8] sm:$0xff]  ;;  %849 = vrsqrt.f32 %v174_v25  ;;  %v159_v33 = vld [vmem:[#allocation2 + $0x18] sm:$0xff] }
  0xa0   :  { %144 = vst.msk [vmem:[#allocation2 + $0x38] sm:$0xff] %vm23_vm0, %v127_v28  ;;  %143 = vst.msk [vmem:[#allocation2 + $0x30] sm:$0xff] %vm23_vm0, %v126_v30  ;;  %v173_v34 = vadd.f32 1.0, %v157_v31  ;;  %v175_v35 = vadd.f32 1.0, %v159_v33 }
  0xa1   :  { %v107_v36 = vpop.xlane.xlu1 %106  ;;  %v105_v37 = vpop.xlane.xlu0 %104 }
  0xa2   :  { %v129_v38 = vadd.f32 %v107_v36, %v49_v29  ;;  %851 = vrsqrt.f32 %v173_v34  ;;  %v128_v40 = vadd.f32 %v105_v37, %v48_v32 }
  0xa3   :  { %853 = vrsqrt.f32 %v175_v35  ;;  %v160_v42 = vld [vmem:[#allocation2 + $0x20] sm:$0xff]  ;;  %v161_v43 = vld [vmem:[#allocation2 + $0x28] sm:$0xff] }
  0xa4   :  { %146 = vst.msk [vmem:[#allocation2 + $0x48] sm:$0xff] %vm23_vm0, %v129_v38  ;;  %145 = vst.msk [vmem:[#allocation2 + $0x40] sm:$0xff] %vm23_vm0, %v128_v40  ;;  %v176_v44 = vadd.f32 1.0, %v160_v42  ;;  %v177_v45 = vadd.f32 1.0, %v161_v43 }
  0xa5   :  { %v111_v46 = vpop.xlane.xlu1 %110  ;;  %v109_v47 = vpop.xlane.xlu0 %108 }
  0xa6   :  { %v131_v48 = vadd.f32 %v111_v46, %v51_v39  ;;  %v130_v50 = vadd.f32 %v109_v47, %v50_v41  ;;  %855 = vrsqrt.f32 %v176_v44 }
  0xa7   :  { %857 = vrsqrt.f32 %v177_v45  ;;  %v162_v52 = vld [vmem:[#allocation2 + $0x30] sm:$0xff]  ;;  %v163_v53 = vld [vmem:[#allocation2 + $0x38] sm:$0xff] }
  0xa8   :  { %v848_v54 = vpop.eup %847  ;;  %148 = vst.msk [vmem:[#allocation2 + $0x58] sm:$0xff] %vm23_vm0, %v131_v48  ;;  %147 = vst.msk [vmem:[#allocation2 + $0x50] sm:$0xff] %vm23_vm0, %v130_v50  ;;  %v178_v55 = vadd.f32 1.0, %v162_v52  ;;  %v179_v56 = vadd.f32 1.0, %v163_v53  ;;  %v588_v50 = vld [vmem:[%s1158_s3] ss:$0 sm:$0xff] }
  0xa9   :  { %v850_v57 = vpop.eup %849  ;;  %v115_v58 = vpop.xlane.xlu1 %114  ;;  %390 = vperm.xlu0 %845, %v848_v54   ;;  %564 = vst.msk [vmem:[%s1157_s5] sm:$0xff] %vm23_vm0, %v848_v54 }
  0xaa   :  { %v113_v59 = vpop.xlane.xlu0 %112  ;;  %v133_v60 = vadd.f32 %v115_v58, %v53_v49  ;;  %566 = vst.msk [vmem:[%s1157_s5 + $0x10] sm:$0xff] %vm23_vm0, %v850_v57  ;;  %859 = vrsqrt.f32 %v178_v55 }
  0xab   :  { %v132_v62 = vadd.f32 %v113_v59, %v52_v51  ;;  %v165_v63 = vld [vmem:[#allocation2 + $0x48] sm:$0xff]  ;;  %861 = vrsqrt.f32 %v179_v56  ;;  %v164_v1 = vld [vmem:[#allocation2 + $0x40] sm:$0xff] }
  0xac   :  { %v852_v2 = vpop.eup %851  ;;  %150 = vst.msk [vmem:[#allocation2 + $0x68] sm:$0xff] %vm23_vm0, %v133_v60  ;;  %v181_v3 = vadd.f32 1.0, %v165_v63  ;;  %v180_v4 = vadd.f32 1.0, %v164_v1 }
  0xad   :  { %149 = vst.msk [vmem:[#allocation2 + $0x60] sm:$0xff] %vm23_vm0, %v132_v62  ;;  %v854_v5 = vpop.eup %853  ;;  %v119_v6 = vpop.xlane.xlu1 %118  ;;  %395 = vperm.xlu1 %846, %v852_v2   ;;  %565 = vst.msk [vmem:[%s1157_s5 + $0x8] sm:$0xff] %vm23_vm0, %v852_v2 }
  0xae   :  { %v117_v7 = vpop.xlane.xlu0 %116  ;;  %v135_v8 = vadd.f32 %v119_v6, %v55_v61  ;;  %567 = vst.msk [vmem:[%s1157_s5 + $0x18] sm:$0xff] %vm23_vm0, %v854_v5  ;;  %863 = vrsqrt.f32 %v181_v3 }
  0xaf   :  { %v134_v9 = vadd.f32 %v117_v7, %v54_v0  ;;  %v167_v10 = vld [vmem:[#allocation2 + $0x58] sm:$0xff]  ;;  %865 = vrsqrt.f32 %v180_v4  ;;  %v166_v11 = vld [vmem:[#allocation2 + $0x50] sm:$0xff] }
  0xb0   :  { %v856_v12 = vpop.eup %855  ;;  %152 = vst.msk [vmem:[#allocation2 + $0x78] sm:$0xff] %vm23_vm0, %v135_v8  ;;  %v183_v13 = vadd.f32 1.0, %v167_v10  ;;  %v182_v14 = vadd.f32 1.0, %v166_v11 }
  0xb1   :  { %151 = vst.msk [vmem:[#allocation2 + $0x70] sm:$0xff] %vm23_vm0, %v134_v9  ;;  %v858_v15 = vpop.eup %857  ;;  %400 = vperm.xlu1 %846, %v850_v57   ;;  %568 = vst.msk [vmem:[%s1157_s5 + $0x20] sm:$0xff] %vm23_vm0, %v856_v12 }
  0xb2   :  { %867 = vrsqrt.f32 %v183_v13  ;;  %569 = vst.msk [vmem:[%s1157_s5 + $0x28] sm:$0xff] %vm23_vm0, %v858_v15 }
  0xb3   :  { %v169_v16 = vld [vmem:[#allocation2 + $0x68] sm:$0xff]  ;;  %869 = vrsqrt.f32 %v182_v14 }
  0xb4   :  { %v168_v17 = vld [vmem:[#allocation2 + $0x60] sm:$0xff]  ;;  %v860_v18 = vpop.eup %859  ;;  %v185_v19 = vadd.f32 1.0, %v169_v16 }
  0xb5   :  { %v184_v20 = vadd.f32 1.0, %v168_v17  ;;  %v862_v21 = vpop.eup %861  ;;  %405 = vperm.xlu1 %846, %v854_v5   ;;  %570 = vst.msk [vmem:[%s1157_s5 + $0x30] sm:$0xff] %vm23_vm0, %v860_v18 }
  0xb6   :  { %871 = vrsqrt.f32 %v185_v19  ;;  %571 = vst.msk [vmem:[%s1157_s5 + $0x38] sm:$0xff] %vm23_vm0, %v862_v21 }
  0xb7   :  { %v171_v22 = vld [vmem:[#allocation2 + $0x78] sm:$0xff]  ;;  %873 = vrsqrt.f32 %v184_v20 }
  0xb8   :  { %v170_v23 = vld [vmem:[#allocation2 + $0x70] sm:$0xff]  ;;  %v864_v24 = vpop.eup %863  ;;  %v187_v25 = vadd.f32 1.0, %v171_v22 }
  0xb9   :  { %v186_v26 = vadd.f32 1.0, %v170_v23  ;;  %v866_v27 = vpop.eup %865  ;;  %573 = vst.msk [vmem:[%s1157_s5 + $0x48] sm:$0xff] %vm23_vm0, %v864_v24  ;;  %435 = vperm.xlu0 %845, %v864_v24   ;;  %410 = vperm.xlu1 %846, %v856_v12  }
  0xba   :  { %875 = vrsqrt.f32 %v187_v25  ;;  %572 = vst.msk [vmem:[%s1157_s5 + $0x40] sm:$0xff] %vm23_vm0, %v866_v27 }
  0xbb   :  { %877 = vrsqrt.f32 %v186_v26 }
  0xbc   :  { %v868_v28 = vpop.eup %867 }
  0xbd   :  { %v870_v29 = vpop.eup %869  ;;  %575 = vst.msk [vmem:[%s1157_s5 + $0x58] sm:$0xff] %vm23_vm0, %v868_v28  ;;  %445 = vperm.xlu0 %845, %v868_v28   ;;  %415 = vperm.xlu1 %846, %v858_v15  }
  0xbe   :  { %574 = vst.msk [vmem:[%s1157_s5 + $0x50] sm:$0xff] %vm23_vm0, %v870_v29 }
  0xc0   :  { %v872_v30 = vpop.eup %871 }
  0xc1   :  { %v874_v31 = vpop.eup %873  ;;  %577 = vst.msk [vmem:[%s1157_s5 + $0x68] sm:$0xff] %vm23_vm0, %v872_v30  ;;  %455 = vperm.xlu0 %845, %v872_v30   ;;  %420 = vperm.xlu1 %846, %v860_v18  }
  0xc2   :  { %576 = vst.msk [vmem:[%s1157_s5 + $0x60] sm:$0xff] %vm23_vm0, %v874_v31 }
  0xc4   :  { %v876_v32 = vpop.eup %875 }
  0xc5   :  { %v878_v33 = vpop.eup %877  ;;  %579 = vst.msk [vmem:[%s1157_s5 + $0x78] sm:$0xff] %vm23_vm0, %v876_v32  ;;  %465 = vperm.xlu0 %845, %v876_v32   ;;  %425 = vperm.xlu1 %846, %v862_v21  }
  0xc6   :  { %578 = vst.msk [vmem:[%s1157_s5 + $0x70] sm:$0xff] %vm23_vm0, %v878_v33 }
  0xc9   :  { %430 = vperm.xlu1 %846, %v866_v27  }
  0xcd   :  { %440 = vperm.xlu1 %846, %v870_v29  }
  0xd1   :  { %450 = vperm.xlu1 %846, %v874_v31  }
  0xd5   :  { %460 = vperm.xlu1 %846, %v878_v33  }
  0xf8   :  { %v773_v34 = vpop.f32.mrb[0].mxu0  ;;  %v785_v35 = vpop.f32.mrb[0].mxu1 }
  0xf9   :  { %v309_v36 = vpop.f32.mrb[1].mxu0  ;;  %v349_v37 = vpop.f32.mrb[1].mxu1  ;;  %v315_v51 = vadd.f32 %v773_v34, %v588_v50  ;;  %v355_v13 = vadd.f32 %v785_v35, %v588_v50 }
  0xfa   :  { %v310_v52 = vadd.f32 %v588_v50, %v309_v36  ;;  %v350_v14 = vadd.f32 %v588_v50, %v349_v37 }
  0xfc   :  { %v776_v38 = vpop.f32.mrb[2].mxu0  ;;  %v788_v39 = vpop.f32.mrb[2].mxu1 }
  0xfd   :  { %v319_v40 = vpop.f32.mrb[3].mxu0  ;;  %v359_v41 = vpop.f32.mrb[3].mxu1  ;;  %v325_v59 = vadd.f32 %v776_v38, %v588_v50  ;;  %v365_v21 = vadd.f32 %v788_v39, %v588_v50 }
  0xfe   :  { %v320_v60 = vadd.f32 %v588_v50, %v319_v40  ;;  %v360_v22 = vadd.f32 %v588_v50, %v359_v41 }
 0x100   :  { %v779_v42 = vpop.f32.mrb[4].mxu0  ;;  %v791_v43 = vpop.f32.mrb[4].mxu1 }
 0x101   :  { %v329_v44 = vpop.f32.mrb[5].mxu0  ;;  %v369_v45 = vpop.f32.mrb[5].mxu1  ;;  %v335_v2 = vadd.f32 %v779_v42, %v588_v50  ;;  %v375_v28 = vadd.f32 %v791_v43, %v588_v50 }
 0x102   :  { %v330_v3 = vadd.f32 %v588_v50, %v329_v44  ;;  %v370_v29 = vadd.f32 %v588_v50, %v369_v45 }
 0x104   :  { %v782_v46 = vpop.f32.mrb[6].mxu0  ;;  %v794_v47 = vpop.f32.mrb[6].mxu1 }
 0x105   :  { %v339_v48 = vpop.f32.mrb[7].mxu0  ;;  %v379_v49 = vpop.f32.mrb[7].mxu1  ;;  %v345_v10 = vadd.f32 %v782_v46, %v588_v50  ;;  %v385_v34 = vadd.f32 %v794_v47, %v588_v50 }
 0x106   :  { %v340_v11 = vadd.f32 %v588_v50, %v339_v48  ;;  %v380_v36 = vadd.f32 %v588_v50, %v379_v49 }
 0x128   :  { %v391_v53 = vpop.permute.xlu0 %390 }
 0x129   :  { %v468_v55 = vmul.f32 %v391_v53, %v310_v52 }
 0x12c   :  { %v396_v54 = vpop.permute.xlu1 %395 }
 0x12d   :  { %v469_v56 = vmul.f32 %v396_v54, %v315_v51 }
 0x12f   :  { %v656_v57 = vpack.c.bf16 %v469_v56, %v468_v55 }
 0x130   :  { %v401_v58 = vpop.permute.xlu1 %400 }
 0x131   :  { %657 = vst [vmem:[%s1159_s4] sm:$0xff] %v656_v57   ;;  %v470_v62 = vmul.f32 %v401_v58, %v320_v60 }
 0x134   :  { %v406_v61 = vpop.permute.xlu1 %405 }
 0x135   :  { %v471_v63 = vmul.f32 %v406_v61, %v325_v59 }
 0x137   :  { %v661_v0 = vpack.c.bf16 %v471_v63, %v470_v62 }
 0x138   :  { %v411_v1 = vpop.permute.xlu1 %410  ;;  %v436_v8 = vpop.permute.xlu0 %435 }
 0x139   :  { %700 = vst [vmem:[%s1159_s4 + $0x8] sm:$0xff] %v661_v0   ;;  %v472_v5 = vmul.f32 %v411_v1, %v330_v3  ;;  %v477_v20 = vmul.f32 %v436_v8, %v355_v13 }
 0x13c   :  { %v416_v4 = vpop.permute.xlu1 %415  ;;  %v446_v17 = vpop.permute.xlu0 %445 }
 0x13d   :  { %v473_v6 = vmul.f32 %v416_v4, %v335_v2  ;;  %v479_v27 = vmul.f32 %v446_v17, %v365_v21 }
 0x13f   :  { %v666_v7 = vpack.c.bf16 %v473_v6, %v472_v5 }
 0x140   :  { %v421_v9 = vpop.permute.xlu1 %420  ;;  %v456_v25 = vpop.permute.xlu0 %455 }
 0x141   :  { %701 = vst [vmem:[%s1159_s4 + $0x10] sm:$0xff] %v666_v7   ;;  %v474_v15 = vmul.f32 %v421_v9, %v340_v11  ;;  %v481_v33 = vmul.f32 %v456_v25, %v375_v28 }
 0x144   :  { %v426_v12 = vpop.permute.xlu1 %425  ;;  %v466_v37 = vpop.permute.xlu0 %465 }
 0x145   :  { %v475_v16 = vmul.f32 %v426_v12, %v345_v10  ;;  %v483_v40 = vmul.f32 %v466_v37, %v385_v34 }
 0x147   :  { %v671_v18 = vpack.c.bf16 %v475_v16, %v474_v15 }
 0x148   :  { %v431_v19 = vpop.permute.xlu1 %430 }
 0x149   :  { %702 = vst [vmem:[%s1159_s4 + $0x18] sm:$0xff] %v671_v18   ;;  %v476_v23 = vmul.f32 %v431_v19, %v350_v14 }
 0x14b   :  { %v676_v24 = vpack.c.bf16 %v477_v20, %v476_v23 }
 0x14c   :  { %v441_v26 = vpop.permute.xlu1 %440 }
 0x14d   :  { %703 = vst [vmem:[%s1159_s4 + $0x20] sm:$0xff] %v676_v24   ;;  %v478_v30 = vmul.f32 %v441_v26, %v360_v22 }
 0x14f   :  { %v681_v31 = vpack.c.bf16 %v479_v27, %v478_v30 }
 0x150   :  { %v451_v32 = vpop.permute.xlu1 %450 }
 0x151   :  { %704 = vst [vmem:[%s1159_s4 + $0x28] sm:$0xff] %v681_v31   ;;  %v480_v35 = vmul.f32 %v451_v32, %v370_v29 }
 0x153   :  { %v686_v38 = vpack.c.bf16 %v481_v33, %v480_v35 }
 0x154   :  { %v461_v39 = vpop.permute.xlu1 %460 }
 0x155   :  { %705 = vst [vmem:[%s1159_s4 + $0x30] sm:$0xff] %v686_v38   ;;  %v482_v41 = vmul.f32 %v461_v39, %v380_v36 }
 0x157   :  { %v691_v42 = vpack.c.bf16 %v483_v40, %v482_v41 }
 0x159   :  { %706 = vst [vmem:[%s1159_s4 + $0x38] sm:$0xff] %v691_v42  }

// kernel: msg_pass_module.3
= control target key start
LH: loop header
LB: loop body
LE: loop exit
PB: predicated region body
PF: predicated region fallthrough
CT: control target
= control target key end

     0   :  { %v657_v2 = vmov 0   ;;  %s901_s1 = inlined_call_operand.vmem [shape: bf16[128,128], index: 1, kind: input, shape index: {}]   ;;  %s902_s0 = inlined_call_operand.vmem [shape: bf16[128,128], index: 0, kind: input, shape index: {}]   ;;  %s903_s2 = inlined_call_operand.vmem [shape: f32[128,1], index: 2, kind: input, shape index: {}]   ;;  %s904_s3 = inlined_call_operand.vmem [shape: f32[128,128], index: 3, kind: output, shape index: {}]  }
   0x1   :  { %v681_v0 = vld [vmem:[%s901_s1] sm:$0xff]   ;;  %v686_v1 = vld [vmem:[%s901_s1 + $0x8] sm:$0xff]   ;;  %632 = vset.pattern.permute.xlu1 %v657_v2  ;;  %631 = vset.pattern.permute.xlu0 %v657_v2  ;;  %v691_v3 = vld [vmem:[%s901_s1 + $0x10] sm:$0xff]  }
   0x2   :  { %582 = vmatprep.subr.bf16.mxu0 %v681_v0  ;;  %614 = vmatprep.subr.bf16.mxu1 %v681_v0  ;;  %v641_v4 = vld [vmem:[%s902_s0] sm:$0xff]   ;;  %v708_v6 = vld [vmem:[%s901_s1 + $0x18] sm:$0xff]   ;;  %v402_v8 = vld [vmem:[%s903_s2 + $0x10] sm:$0xff]  ;;  %v335_v44 = vunpack.c.l.bf16 %v686_v1  ;;  %v333_v46 = vunpack.c.l.bf16 %v681_v0  ;;  %v336_v50 = vunpack.c.h.bf16 %v686_v1  ;;  %v334_v54 = vunpack.c.h.bf16 %v681_v0 }
   0x3   :  { %583 = vmatpush3.bf16.msra.mxu0 %v681_v0  ;;  %622 = vmatpush3.bf16.msra.mxu1 %v681_v0  ;;  %v642_v5 = vld [vmem:[%s902_s0 + $0x20] sm:$0xff]   ;;  %v403_v10 = vld [vmem:[%s903_s2 + $0x18] sm:$0xff]  ;;  %v735_v11 = vld [vmem:[%s901_s1 + $0x28] sm:$0xff]   ;;  %v339_v60 = vunpack.c.l.bf16 %v708_v6 }
   0x4   :  { %584 = vmatprep.subr.bf16.mxu0 %v686_v1  ;;  %615 = vmatprep.subr.bf16.mxu1 %v686_v1  ;;  %v717_v7 = vld [vmem:[%s901_s1 + $0x20] sm:$0xff]   ;;  %v401_v12 = vld [vmem:[%s903_s2 + $0x8] sm:$0xff]  ;;  %v750_v14 = vld [vmem:[%s901_s1 + $0x30] sm:$0xff]   ;;  %v343_v45 = vunpack.c.l.bf16 %v735_v11  ;;  %v344_v51 = vunpack.c.h.bf16 %v735_v11 }
   0x5   :  { %598 = vmatprep.mubr.bf16.mxu0 %v641_v4  ;;  %606 = vmatprep.mubr.bf16.mxu1 %v642_v5  ;;  %v400_v9 = vld [vmem:[%s903_s2] sm:$0xff]  ;;  %v405_v13 = vld [vmem:[%s903_s2 + $0x28] sm:$0xff]  ;;  %v407_v16 = vld [vmem:[%s903_s2 + $0x38] sm:$0xff]  ;;  %v341_v47 = vunpack.c.l.bf16 %v717_v7  ;;  %v342_v55 = vunpack.c.h.bf16 %v717_v7  ;;  %v337_v4 = vunpack.c.l.bf16 %v691_v3  ;;  %v345_v5 = vunpack.c.l.bf16 %v750_v14 }
   0x6   :  { %428 = vperm.xlu1 %632, %v402_v8   ;;  %418 = vperm.xlu0 %631, %v400_v9   ;;  %v404_v15 = vld [vmem:[%s903_s2 + $0x20] sm:$0xff]  ;;  %v765_v17 = vld [vmem:[%s901_s1 + $0x38] sm:$0xff]   ;;  %v406_v18 = vld [vmem:[%s903_s2 + $0x30] sm:$0xff] }
   0x7   :  { %585 = vmatpush3.bf16.msra.mxu0 %v686_v1  ;;  %623 = vmatpush3.bf16.msra.mxu1 %v686_v1  ;;  %v409_v19 = vld [vmem:[%s903_s2 + $0x48] sm:$0xff]  ;;  %v408_v20 = vld [vmem:[%s903_s2 + $0x40] sm:$0xff]  ;;  %v411_v21 = vld [vmem:[%s903_s2 + $0x58] sm:$0xff]  ;;  %v347_v61 = vunpack.c.l.bf16 %v765_v17 }
   0x8   :  { %586 = vmatprep.subr.bf16.mxu0 %v691_v3  ;;  %616 = vmatprep.subr.bf16.mxu1 %v691_v3  ;;  %v643_v22 = vld [vmem:[%s902_s0 + $0x8] sm:$0xff]   ;;  %v410_v24 = vld [vmem:[%s903_s2 + $0x50] sm:$0xff]  ;;  %v412_v28 = vld [vmem:[%s903_s2 + $0x60] sm:$0xff] }
   0x9   :  { %v644_v23 = vld [vmem:[%s902_s0 + $0x28] sm:$0xff]   ;;  %v645_v25 = vld [vmem:[%s902_s0 + $0x10] sm:$0xff]   ;;  %v415_v29 = vld [vmem:[%s903_s2 + $0x78] sm:$0xff] }
   0xa   :  { %433 = vperm.xlu1 %632, %v403_v10   ;;  %423 = vperm.xlu0 %631, %v401_v12   ;;  %v646_v26 = vld [vmem:[%s902_s0 + $0x30] sm:$0xff]   ;;  %v413_v27 = vld [vmem:[%s903_s2 + $0x68] sm:$0xff]  ;;  %v647_v30 = vld [vmem:[%s902_s0 + $0x18] sm:$0xff]  }
   0xb   :  { %587 = vmatpush3.bf16.msra.mxu0 %v691_v3  ;;  %624 = vmatpush3.bf16.msra.mxu1 %v691_v3  ;;  %v648_v31 = vld [vmem:[%s902_s0 + $0x38] sm:$0xff]   ;;  %v414_v32 = vld [vmem:[%s903_s2 + $0x70] sm:$0xff] }
   0xc   :  { %588 = vmatprep.subr.bf16.mxu0 %v708_v6  ;;  %617 = vmatprep.subr.bf16.mxu1 %v708_v6 }
   0xe   :  { %443 = vperm.xlu1 %632, %v405_v13   ;;  %438 = vperm.xlu0 %631, %v404_v15  }
   0xf   :  { %589 = vmatpush3.bf16.msra.mxu0 %v708_v6  ;;  %625 = vmatpush3.bf16.msra.mxu1 %v708_v6 }
  0x10   :  { %590 = vmatprep.subr.bf16.mxu0 %v717_v7  ;;  %618 = vmatprep.subr.bf16.mxu1 %v717_v7 }
  0x12   :  { %453 = vperm.xlu1 %632, %v407_v16   ;;  %448 = vperm.xlu0 %631, %v406_v18  }
  0x13   :  { %591 = vmatpush3.bf16.msra.mxu0 %v717_v7  ;;  %626 = vmatpush3.bf16.msra.mxu1 %v717_v7 }
  0x14   :  { %592 = vmatprep.subr.bf16.mxu0 %v735_v11  ;;  %619 = vmatprep.subr.bf16.mxu1 %v735_v11 }
  0x16   :  { %463 = vperm.xlu1 %632, %v409_v19   ;;  %458 = vperm.xlu0 %631, %v408_v20  }
  0x17   :  { %593 = vmatpush3.bf16.msra.mxu0 %v735_v11  ;;  %627 = vmatpush3.bf16.msra.mxu1 %v735_v11 }
  0x18   :  { %594 = vmatprep.subr.bf16.mxu0 %v750_v14  ;;  %620 = vmatprep.subr.bf16.mxu1 %v750_v14 }
  0x1a   :  { %473 = vperm.xlu1 %632, %v411_v21   ;;  %468 = vperm.xlu0 %631, %v410_v24  }
  0x1b   :  { %595 = vmatpush3.bf16.msra.mxu0 %v750_v14  ;;  %628 = vmatpush3.bf16.msra.mxu1 %v750_v14 }
  0x1c   :  { %596 = vmatprep.subr.bf16.mxu0 %v765_v17  ;;  %621 = vmatprep.subr.bf16.mxu1 %v765_v17 }
  0x1e   :  { %483 = vperm.xlu1 %632, %v413_v27   ;;  %478 = vperm.xlu0 %631, %v412_v28  }
  0x1f   :  { %597 = vmatpush3.bf16.msra.mxu0 %v765_v17  ;;  %629 = vmatpush3.bf16.msra.mxu1 %v765_v17 }
  0x22   :  { %599 = vmatmul.mubr.bf16.vlgmr.msra.gmra.mrb[0].mxu0 %v643_v22  ;;  %607 = vmatmul.mubr.bf16.vlgmr.msra.gmra.mrb[0].mxu1 %v644_v23 }
  0x23   :  { %602 = vmatprep.mubr.bf16.mxu0 %v645_v25  ;;  %610 = vmatprep.mubr.bf16.mxu1 %v646_v26 }
  0x24   :  { %493 = vperm.xlu1 %632, %v415_v29   ;;  %488 = vperm.xlu0 %631, %v414_v32  }
  0x2a   :  { %603 = vmatmul.mubr.bf16.gmra.mrb[4].mxu0 %v647_v30  ;;  %611 = vmatmul.mubr.bf16.gmra.mrb[4].mxu1 %v648_v31  ;;  %v340_v30 = vunpack.c.h.bf16 %v708_v6  ;;  %v348_v31 = vunpack.c.h.bf16 %v765_v17 }
  0x85   :  { %v419_v33 = vpop.permute.xlu0 %418  ;;  %v429_v34 = vpop.permute.xlu1 %428 }
  0x89   :  { %v424_v35 = vpop.permute.xlu0 %423  ;;  %v434_v36 = vpop.permute.xlu1 %433 }
  0x8d   :  { %v822_v37 = vpop.permute.xlu0 %438  ;;  %v824_v38 = vpop.permute.xlu1 %443 }
  0x91   :  { %v826_v39 = vpop.permute.xlu0 %448  ;;  %v828_v40 = vpop.permute.xlu1 %453 }
  0x95   :  { %v459_v41 = vpop.permute.xlu0 %458  ;;  %v464_v42 = vpop.permute.xlu1 %463 }
  0x99   :  { %v469_v43 = vpop.permute.xlu0 %468  ;;  %v474_v48 = vpop.permute.xlu1 %473 }
  0x9d   :  { %v834_v49 = vpop.permute.xlu0 %478  ;;  %v484_v22 = vpop.permute.xlu1 %483 }
  0xa3   :  { %v489_v27 = vpop.permute.xlu0 %488 }
  0xf5   :  { %v600_v52 = vpop.f32.mrb[0].mxu0  ;;  %v608_v53 = vpop.f32.mrb[0].mxu1 }
  0xf6   :  { %v351_v56 = vadd.f32 %v600_v52, %v335_v44  ;;  %v359_v57 = vadd.f32 %v608_v53, %v343_v45  ;;  %v218_v58 = vpop.f32.mrb[1].mxu0  ;;  %v250_v59 = vpop.f32.mrb[1].mxu1 }
  0xf7   :  { %v349_v62 = vadd.f32 %v333_v46, %v218_v58  ;;  %v357_v63 = vadd.f32 %v341_v47, %v250_v59  ;;  %v601_v2 = vpop.f32.mrb[2].mxu0  ;;  %v609_v1 = vpop.f32.mrb[2].mxu1 }
  0xf8   :  { %v498_v8 = vmul.f32 %v429_v34, %v351_v56  ;;  %v506_v0 = vmul.f32 %v469_v43, %v359_v57  ;;  %v352_v9 = vadd.f32 %v601_v2, %v336_v50  ;;  %v360_v7 = vadd.f32 %v609_v1, %v344_v51  ;;  %v221_v10 = vpop.f32.mrb[3].mxu0  ;;  %v253_v11 = vpop.f32.mrb[3].mxu1 }
  0xf9   :  { %v496_v12 = vmul.f32 %v419_v33, %v349_v62  ;;  %v504_v13 = vmul.f32 %v459_v41, %v357_v63  ;;  %v350_v15 = vadd.f32 %v334_v54, %v221_v10  ;;  %v358_v16 = vadd.f32 %v342_v55, %v253_v11  ;;  %v494_v53 = vpop.permute.xlu1 %493 }
  0xfa   :  { %v514_v18 = vmax.f32 %v498_v8, 0.0  ;;  %v522_v19 = vmax.f32 %v506_v0, 0.0  ;;  %v499_v20 = vmul.f32 %v434_v36, %v352_v9  ;;  %v507_v21 = vmul.f32 %v474_v48, %v360_v7 }
  0xfb   :  { %v512_v23 = vmax.f32 %v496_v12, 0.0  ;;  %v520_v24 = vmax.f32 %v504_v13, 0.0  ;;  %v497_v25 = vmul.f32 %v424_v35, %v350_v15  ;;  %v505_v26 = vmul.f32 %v464_v42, %v358_v16 }
  0xfc   :  { %530 = vst [vmem:[%s904_s3 + $0x10] sm:$0xff] %v514_v18  ;;  %538 = vst [vmem:[%s904_s3 + $0x50] sm:$0xff] %v522_v19  ;;  %v515_v28 = vmax.f32 %v499_v20, 0.0  ;;  %v523_v29 = vmax.f32 %v507_v21, 0.0  ;;  %v338_v36 = vunpack.c.h.bf16 %v691_v3  ;;  %v346_v41 = vunpack.c.h.bf16 %v750_v14 }
  0xfd   :  { %528 = vst [vmem:[%s904_s3] sm:$0xff] %v512_v23  ;;  %536 = vst [vmem:[%s904_s3 + $0x40] sm:$0xff] %v520_v24  ;;  %v513_v32 = vmax.f32 %v497_v25, 0.0  ;;  %v521_v33 = vmax.f32 %v505_v26, 0.0  ;;  %v604_v34 = vpop.f32.mrb[4].mxu0  ;;  %v612_v35 = vpop.f32.mrb[4].mxu1 }
  0xfe   :  { %531 = vst [vmem:[%s904_s3 + $0x18] sm:$0xff] %v515_v28  ;;  %539 = vst [vmem:[%s904_s3 + $0x58] sm:$0xff] %v523_v29  ;;  %v355_v6 = vadd.f32 %v604_v34, %v339_v60  ;;  %v363_v17 = vadd.f32 %v612_v35, %v347_v61  ;;  %v234_v42 = vpop.f32.mrb[5].mxu0  ;;  %v266_v43 = vpop.f32.mrb[5].mxu1 }
  0xff   :  { %529 = vst [vmem:[%s904_s3 + $0x8] sm:$0xff] %v513_v32  ;;  %537 = vst [vmem:[%s904_s3 + $0x48] sm:$0xff] %v521_v33  ;;  %v353_v3 = vadd.f32 %v337_v4, %v234_v42  ;;  %v361_v14 = vadd.f32 %v345_v5, %v266_v43  ;;  %v605_v44 = vpop.f32.mrb[6].mxu0  ;;  %v613_v45 = vpop.f32.mrb[6].mxu1 }
 0x100   :  { %v502_v46 = vmul.f32 %v826_v39, %v355_v6  ;;  %v510_v47 = vmul.f32 %v489_v27, %v363_v17  ;;  %v356_v48 = vadd.f32 %v605_v44, %v340_v30  ;;  %v364_v50 = vadd.f32 %v613_v45, %v348_v31  ;;  %v237_v51 = vpop.f32.mrb[7].mxu0  ;;  %v269_v52 = vpop.f32.mrb[7].mxu1 }
 0x101   :  { %v500_v54 = vmul.f32 %v822_v37, %v353_v3  ;;  %v508_v55 = vmul.f32 %v834_v49, %v361_v14  ;;  %v354_v56 = vadd.f32 %v338_v36, %v237_v51  ;;  %v362_v57 = vadd.f32 %v346_v41, %v269_v52 }
 0x102   :  { %v518_v58 = vmax.f32 %v502_v46, 0.0  ;;  %v526_v59 = vmax.f32 %v510_v47, 0.0  ;;  %v503_v60 = vmul.f32 %v828_v40, %v356_v48  ;;  %v511_v61 = vmul.f32 %v494_v53, %v364_v50 }
 0x103   :  { %v516_v62 = vmax.f32 %v500_v54, 0.0  ;;  %v524_v63 = vmax.f32 %v508_v55, 0.0  ;;  %v501_v39 = vmul.f32 %v824_v38, %v354_v56  ;;  %v509_v2 = vmul.f32 %v484_v22, %v362_v57 }
 0x104   :  { %534 = vst [vmem:[%s904_s3 + $0x30] sm:$0xff] %v518_v58  ;;  %542 = vst [vmem:[%s904_s3 + $0x70] sm:$0xff] %v526_v59  ;;  %v519_v37 = vmax.f32 %v503_v60, 0.0  ;;  %v527_v49 = vmax.f32 %v511_v61, 0.0 }
 0x105   :  { %532 = vst [vmem:[%s904_s3 + $0x20] sm:$0xff] %v516_v62  ;;  %540 = vst [vmem:[%s904_s3 + $0x60] sm:$0xff] %v524_v63  ;;  %v517_v38 = vmax.f32 %v501_v39, 0.0  ;;  %v525_v40 = vmax.f32 %v509_v2, 0.0 }
 0x106   :  { %535 = vst [vmem:[%s904_s3 + $0x38] sm:$0xff] %v519_v37  ;;  %543 = vst [vmem:[%s904_s3 + $0x78] sm:$0xff] %v527_v49 }
 0x107   :  { %533 = vst [vmem:[%s904_s3 + $0x28] sm:$0xff] %v517_v38  ;;  %541 = vst [vmem:[%s904_s3 + $0x68] sm:$0xff] %v525_v40 }

</bundles_post_ra>
